<compile_context>
chip_gen: v5e
topology: v5e:2x2
jax: 0.10.0
libtpu: 0.0.40
codegen_flags: <defaults>
</compile_context>

<pallas_src>
import functools

import jax
import jax.numpy as jnp
import numpy as np
from jax.experimental import pallas as pl
from jax.experimental.pallas import tpu as pltpu


def _gaussian_kernel1d(kernel_size: int) -> np.ndarray:
    """Normalized 1D Gaussian; its 3-fold outer product equals the module's 3D kernel."""
    sigma = kernel_size / 6.0
    r = np.arange(-(kernel_size // 2), (kernel_size + 1) // 2, dtype=np.float32) ** 2
    g = np.exp(-r / (2.0 * sigma ** 2))
    g /= g.sum()
    return g.astype(np.float32)


def _gaussian_kernel3d(kernel_size: int) -> np.ndarray:
    """3D weights exactly as Gaussian3d.__init__ builds them (used by the reference)."""
    sigma = kernel_size / 6.0
    r = np.arange(-(kernel_size // 2), (kernel_size + 1) // 2, dtype=np.float32) ** 2
    k3 = r[None, None, :] + r[None, :, None] + r[:, None, None]
    k3 = np.exp(-k3 / (2.0 * sigma ** 2))
    k3 /= k3.sum()
    return k3.astype(np.float32)


def _gaussian3d_kernel(x_ref, o_ref, *, g1, D, H, W, k):
    # x_ref / o_ref: (ncb, D*H*W) -- each row is one (n, c) volume, lane-dense.
    HW = H * W
    DHW = D * HW
    p = (k - 1) // 2  # left pad; matches PyTorch padding='same' split (stride 1)

    # Static position vectors used to fold the zero 'same' padding into the tap
    # weights: one compare per boundary tap on a (1, DHW) vector, then a single
    # broadcast vmul against the rolled block (no compare+select on full block).
    idx = jax.lax.broadcasted_iota(jnp.int32, (1, DHW), 1)
    wpos = idx % W    # column inside a W-row
    ppos = idx % HW   # position inside an (H, W) plane

    def shifted(val, s):
        # out[..., i] = val[..., i + s]  (cyclic; wrapped region is masked out)
        sh = (-s) % DHW
        if sh == 0:
            return val
        return pltpu.roll(val, shift=sh, axis=1)

    def tap_coef(weight, pos, s, unit, extent):
        # weight where the source index stays inside [0, extent) along this axis
        if s > 0:
            cond = pos < (extent - s) * unit
        else:
            cond = pos >= (-s) * unit
        return jnp.where(cond, np.float32(weight), np.float32(0.0))

    v = x_ref[...].astype(jnp.float32)

    # ---- pass 1: W axis (lane shift by s; mask row-boundary / wrap taps) ----
    acc = None
    for c in range(k):
        s = c - p
        t = shifted(v, s)
        term = np.float32(g1[c]) * t if s == 0 else tap_coef(g1[c], wpos, s, 1, W) * t
        acc = term if acc is None else acc + term
    v = acc

    # ---- pass 2: H axis (lane shift by s*W; mask plane-boundary / wrap taps) ----
    acc = None
    for b in range(k):
        s = b - p
        t = shifted(v, s * W)
        term = np.float32(g1[b]) * t if s == 0 else tap_coef(g1[b], ppos, s, W, H) * t
        acc = term if acc is None else acc + term
    v = acc

    # ---- pass 3: D axis (lane shift by s*H*W; mask volume-boundary / wrap taps) ----
    acc = None
    for a in range(k):
        s = a - p
        t = shifted(v, s * HW)
        term = np.float32(g1[a]) * t if s == 0 else tap_coef(g1[a], idx, s, HW, D) * t
        acc = term if acc is None else acc + term

    o_ref[...] = acc.astype(o_ref.dtype)


def _pick_block_rows(nc, row_bytes_io, target_block_bytes):
    """Rows (n*c volumes) per block: largest block under the input-bytes target,
    preferring 8-sublane-aligned blocks and >=4 (then >=2) even grid steps so
    both v7x TensorCores get pipelined work."""
    divs = [d for d in range(1, nc + 1) if nc % d == 0]
    aligned = [d for d in divs if d % 8 == 0 or d == nc]  # 8-sublane granule
    for pool in (aligned, divs):
        for min_steps in (4, 2, 1):
            fit = [d for d in pool
                   if d * row_bytes_io <= target_block_bytes and nc // d >= min_steps]
            if fit:
                even = [d for d in fit if (nc // d) % 2 == 0 or nc // d == 1]
                return max(even) if even else max(fit)
    return min(aligned)


def gaussian3d(x, kernel_size: int, *, target_block_bytes=4 << 20):
    """Depthwise 3D Gaussian conv, padding='same'.  x: (N, C, D, H, W)."""
    N, C, D, H, W = x.shape
    k = kernel_size
    g1 = _gaussian_kernel1d(k)

    NC, DHW = N * C, D * H * W
    x2 = x.reshape(NC, DHW)  # free contiguous reshape; DHW becomes the lane axis
    # TODO(synk): if D*H*W is not a multiple of 128, pad W in the wrapper so the
    # output store stays an unmasked lane-dense vst.
    # TODO(synk): for volumes whose single-(n,c) footprint exceeds VMEM (v7x: 64 MiB),
    # add an 'arbitrary' grid axis over D with a (k-1)-deep halo re-fetch per D tile.

    itemsize = jnp.dtype(x.dtype).itemsize
    ncb = _pick_block_rows(NC, DHW * itemsize, target_block_bytes)

    # Real VMEM footprint: double-buffered input + output blocks plus ~6 fp32
    # temporaries (working copy, rolled tap, term, accumulator, spill headroom).
    block_io = ncb * DHW * itemsize
    block_f32 = ncb * DHW * 4
    vmem_limit = int(min(max(4 * block_io + 6 * block_f32 + (2 << 20), 8 << 20),
                         64 << 20))

    kernel = functools.partial(_gaussian3d_kernel, g1=g1, D=D, H=H, W=W, k=k)

    out = pl.pallas_call(
        kernel,
        out_shape=jax.ShapeDtypeStruct((NC, DHW), x.dtype),
        grid_spec=pltpu.PrefetchScalarGridSpec(
            num_scalar_prefetch=0,
            grid=(NC // ncb,),
            in_specs=[pl.BlockSpec((ncb, DHW), lambda i: (i, 0))],
            out_specs=pl.BlockSpec((ncb, DHW), lambda i: (i, 0)),
        ),
        compiler_params=pltpu.CompilerParams(
            dimension_semantics=("parallel",),
            vmem_limit_bytes=vmem_limit,
        ),
    )(x2)
    return out.reshape(N, C, D, H, W)


def _reference(x, kernel_size: int):
    """Pure-JAX depthwise conv3d reference (mirrors nn.Conv3d groups=C)."""
    C = x.shape[1]
    k = kernel_size
    w = jnp.asarray(_gaussian_kernel3d(k))
    w = jnp.broadcast_to(w, (C, 1, k, k, k))
    pad_lo = (k - 1) // 2
    pad_hi = k - 1 - pad_lo
    return jax.lax.conv_general_dilated(
        x, w, window_strides=(1, 1, 1),
        padding=[(pad_lo, pad_hi)] * 3,
        dimension_numbers=("NCDHW", "OIDHW", "NCDHW"),
        feature_group_count=C,
        precision=jax.lax.Precision.HIGHEST)


if __name__ == "__main__":
    N, C, D, H, W = 2, 4, 8, 16, 16
    kernel_size = 3

    key = jax.random.PRNGKey(0)
    x = jax.random.normal(key, (N, C, D, H, W), dtype=jnp.float32)

    y = jax.block_until_ready(gaussian3d(x, kernel_size))
    y_ref = jax.block_until_ready(_reference(x, kernel_size))

    np.testing.assert_allclose(np.asarray(y), np.asarray(y_ref),
                               rtol=1e-5, atol=1e-5)
    print("KERNEL_OK")
</pallas_src>

<mosaic_0001>
module attributes {stable_mosaic.version = 11 : i64} {
  func.func @_gaussian3d_kernel(%arg0: i32, %arg1: memref<8x2048xf32, #tpu.memory_space<vmem>>, %arg2: memref<8x2048xf32, #tpu.memory_space<vmem>>) attributes {dimension_semantics = [#tpu.dimension_semantics<parallel>], iteration_bounds = array<i64: 1>, scalar_prefetch = 0 : i64, scratch_operands = 0 : i64, tpu.core_type = #tpu.core_type<tc>, window_params = [{transform_indices = @transform_0, window_bounds = array<i64: 8, 2048>}, {transform_indices = @transform_1, window_bounds = array<i64: 8, 2048>}]} {
    %0 = tpu.iota {dimensions = array<i32: 1>} : vector<1x2048xi32>
    %c16_i32 = arith.constant 16 : i32
    %c0_i32 = arith.constant 0 : i32
    %1 = arith.cmpi eq, %c16_i32, %c0_i32 : i32
    %c1_i32 = arith.constant 1 : i32
    %2 = arith.select %1, %c1_i32, %c16_i32 : i32
    %3 = vector.broadcast %2 : i32 to vector<1x2048xi32>
    %4 = arith.remsi %0, %3 : vector<1x2048xi32>
    %c0_i32_0 = arith.constant 0 : i32
    %5 = vector.broadcast %c0_i32_0 : i32 to vector<1x2048xi32>
    %6 = arith.cmpi ne, %4, %5 : vector<1x2048xi32>
    %c0_i32_1 = arith.constant 0 : i32
    %7 = vector.broadcast %c0_i32_1 : i32 to vector<1x2048xi32>
    %8 = arith.cmpi slt, %4, %7 : vector<1x2048xi32>
    %c0_i32_2 = arith.constant 0 : i32
    %9 = arith.cmpi slt, %2, %c0_i32_2 : i32
    %10 = vector.broadcast %9 : i1 to vector<1x2048xi1>
    %11 = vector.broadcast %10 : vector<1x2048xi1> to vector<1x2048xi1>
    %12 = arith.xori %8, %11 : vector<1x2048xi1>
    %13 = arith.andi %12, %6 : vector<1x2048xi1>
    %14 = vector.broadcast %2 : i32 to vector<1x2048xi32>
    %15 = arith.addi %4, %14 : vector<1x2048xi32>
    %16 = arith.select %13, %15, %4 : vector<1x2048xi1>, vector<1x2048xi32>
    %c256_i32 = arith.constant 256 : i32
    %c0_i32_3 = arith.constant 0 : i32
    %17 = arith.cmpi eq, %c256_i32, %c0_i32_3 : i32
    %c1_i32_4 = arith.constant 1 : i32
    %18 = arith.select %17, %c1_i32_4, %c256_i32 : i32
    %19 = vector.broadcast %18 : i32 to vector<1x2048xi32>
    %20 = arith.remsi %0, %19 : vector<1x2048xi32>
    %c0_i32_5 = arith.constant 0 : i32
    %21 = vector.broadcast %c0_i32_5 : i32 to vector<1x2048xi32>
    %22 = arith.cmpi ne, %20, %21 : vector<1x2048xi32>
    %c0_i32_6 = arith.constant 0 : i32
    %23 = vector.broadcast %c0_i32_6 : i32 to vector<1x2048xi32>
    %24 = arith.cmpi slt, %20, %23 : vector<1x2048xi32>
    %c0_i32_7 = arith.constant 0 : i32
    %25 = arith.cmpi slt, %18, %c0_i32_7 : i32
    %26 = vector.broadcast %25 : i1 to vector<1x2048xi1>
    %27 = vector.broadcast %26 : vector<1x2048xi1> to vector<1x2048xi1>
    %28 = arith.xori %24, %27 : vector<1x2048xi1>
    %29 = arith.andi %28, %22 : vector<1x2048xi1>
    %30 = vector.broadcast %18 : i32 to vector<1x2048xi32>
    %31 = arith.addi %20, %30 : vector<1x2048xi32>
    %32 = arith.select %29, %31, %20 : vector<1x2048xi1>, vector<1x2048xi32>
    %c0 = arith.constant 0 : index
    %c0_8 = arith.constant 0 : index
    %33 = vector.load %arg1[%c0, %c0_8] : memref<8x2048xf32, #tpu.memory_space<vmem>>, vector<8x2048xf32>
    %c1_i32_9 = arith.constant 1 : i32
    %34 = tpu.dynamic_rotate %33 by %c1_i32_9 dim 1 : vector<8x2048xf32>, i32 -> vector<8x2048xf32>
    %c1_i32_10 = arith.constant 1 : i32
    %35 = vector.broadcast %c1_i32_10 : i32 to vector<1x2048xi32>
    %36 = arith.cmpi sge, %16, %35 : vector<1x2048xi32>
    %cst = arith.constant 0.106506974 : f32
    %cst_11 = arith.constant 0.000000e+00 : f32
    %37 = vector.broadcast %cst : f32 to vector<1x2048xf32>
    %38 = vector.broadcast %cst_11 : f32 to vector<1x2048xf32>
    %39 = arith.select %36, %37, %38 : vector<1x2048xi1>, vector<1x2048xf32>
    %40 = vector.broadcast %39 : vector<1x2048xf32> to vector<8x2048xf32>
    %41 = arith.mulf %40, %34 : vector<8x2048xf32>
    %cst_12 = arith.constant 0.786985993 : f32
    %42 = vector.broadcast %cst_12 : f32 to vector<8x2048xf32>
    %43 = arith.mulf %42, %33 : vector<8x2048xf32>
    %44 = arith.addf %41, %43 : vector<8x2048xf32>
    %c2047_i32 = arith.constant 2047 : i32
    %45 = tpu.dynamic_rotate %33 by %c2047_i32 dim 1 : vector<8x2048xf32>, i32 -> vector<8x2048xf32>
    %c15_i32 = arith.constant 15 : i32
    %46 = vector.broadcast %c15_i32 : i32 to vector<1x2048xi32>
    %47 = arith.cmpi slt, %16, %46 : vector<1x2048xi32>
    %cst_13 = arith.constant 0.106506974 : f32
    %cst_14 = arith.constant 0.000000e+00 : f32
    %48 = vector.broadcast %cst_13 : f32 to vector<1x2048xf32>
    %49 = vector.broadcast %cst_14 : f32 to vector<1x2048xf32>
    %50 = arith.select %47, %48, %49 : vector<1x2048xi1>, vector<1x2048xf32>
    %51 = vector.broadcast %50 : vector<1x2048xf32> to vector<8x2048xf32>
    %52 = arith.mulf %51, %45 : vector<8x2048xf32>
    %53 = arith.addf %44, %52 : vector<8x2048xf32>
    %c16_i32_15 = arith.constant 16 : i32
    %54 = tpu.dynamic_rotate %53 by %c16_i32_15 dim 1 : vector<8x2048xf32>, i32 -> vector<8x2048xf32>
    %c16_i32_16 = arith.constant 16 : i32
    %55 = vector.broadcast %c16_i32_16 : i32 to vector<1x2048xi32>
    %56 = arith.cmpi sge, %32, %55 : vector<1x2048xi32>
    %cst_17 = arith.constant 0.106506974 : f32
    %cst_18 = arith.constant 0.000000e+00 : f32
    %57 = vector.broadcast %cst_17 : f32 to vector<1x2048xf32>
    %58 = vector.broadcast %cst_18 : f32 to vector<1x2048xf32>
    %59 = arith.select %56, %57, %58 : vector<1x2048xi1>, vector<1x2048xf32>
    %60 = vector.broadcast %59 : vector<1x2048xf32> to vector<8x2048xf32>
    %61 = arith.mulf %60, %54 : vector<8x2048xf32>
    %cst_19 = arith.constant 0.786985993 : f32
    %62 = vector.broadcast %cst_19 : f32 to vector<8x2048xf32>
    %63 = arith.mulf %62, %53 : vector<8x2048xf32>
    %64 = arith.addf %61, %63 : vector<8x2048xf32>
    %c2032_i32 = arith.constant 2032 : i32
    %65 = tpu.dynamic_rotate %53 by %c2032_i32 dim 1 : vector<8x2048xf32>, i32 -> vector<8x2048xf32>
    %c240_i32 = arith.constant 240 : i32
    %66 = vector.broadcast %c240_i32 : i32 to vector<1x2048xi32>
    %67 = arith.cmpi slt, %32, %66 : vector<1x2048xi32>
    %cst_20 = arith.constant 0.106506974 : f32
    %cst_21 = arith.constant 0.000000e+00 : f32
    %68 = vector.broadcast %cst_20 : f32 to vector<1x2048xf32>
    %69 = vector.broadcast %cst_21 : f32 to vector<1x2048xf32>
    %70 = arith.select %67, %68, %69 : vector<1x2048xi1>, vector<1x2048xf32>
    %71 = vector.broadcast %70 : vector<1x2048xf32> to vector<8x2048xf32>
    %72 = arith.mulf %71, %65 : vector<8x2048xf32>
    %73 = arith.addf %64, %72 : vector<8x2048xf32>
    %c256_i32_22 = arith.constant 256 : i32
    %74 = tpu.dynamic_rotate %73 by %c256_i32_22 dim 1 : vector<8x2048xf32>, i32 -> vector<8x2048xf32>
    %c256_i32_23 = arith.constant 256 : i32
    %75 = vector.broadcast %c256_i32_23 : i32 to vector<1x2048xi32>
    %76 = arith.cmpi sge, %0, %75 : vector<1x2048xi32>
    %cst_24 = arith.constant 0.106506974 : f32
    %cst_25 = arith.constant 0.000000e+00 : f32
    %77 = vector.broadcast %cst_24 : f32 to vector<1x2048xf32>
    %78 = vector.broadcast %cst_25 : f32 to vector<1x2048xf32>
    %79 = arith.select %76, %77, %78 : vector<1x2048xi1>, vector<1x2048xf32>
    %80 = vector.broadcast %79 : vector<1x2048xf32> to vector<8x2048xf32>
    %81 = arith.mulf %80, %74 : vector<8x2048xf32>
    %cst_26 = arith.constant 0.786985993 : f32
    %82 = vector.broadcast %cst_26 : f32 to vector<8x2048xf32>
    %83 = arith.mulf %82, %73 : vector<8x2048xf32>
    %84 = arith.addf %81, %83 : vector<8x2048xf32>
    %c1792_i32 = arith.constant 1792 : i32
    %85 = tpu.dynamic_rotate %73 by %c1792_i32 dim 1 : vector<8x2048xf32>, i32 -> vector<8x2048xf32>
    %c1792_i32_27 = arith.constant 1792 : i32
    %86 = vector.broadcast %c1792_i32_27 : i32 to vector<1x2048xi32>
    %87 = arith.cmpi slt, %0, %86 : vector<1x2048xi32>
    %cst_28 = arith.constant 0.106506974 : f32
    %cst_29 = arith.constant 0.000000e+00 : f32
    %88 = vector.broadcast %cst_28 : f32 to vector<1x2048xf32>
    %89 = vector.broadcast %cst_29 : f32 to vector<1x2048xf32>
    %90 = arith.select %87, %88, %89 : vector<1x2048xi1>, vector<1x2048xf32>
    %91 = vector.broadcast %90 : vector<1x2048xf32> to vector<8x2048xf32>
    %92 = arith.mulf %91, %85 : vector<8x2048xf32>
    %93 = arith.addf %84, %92 : vector<8x2048xf32>
    %c0_30 = arith.constant 0 : index
    %c0_31 = arith.constant 0 : index
    %94 = vector.load %arg2[%c0_30, %c0_31] : memref<8x2048xf32, #tpu.memory_space<vmem>>, vector<8x2048xf32>
    tpu.vector_store %arg2[%c0_30, %c0_31], %93 {strides = array<i32>} : memref<8x2048xf32, #tpu.memory_space<vmem>>, vector<8x2048xf32>,
    return
  }
  func.func @transform_0(%arg0: i32) -> (i32, i32) {
    %c0_i32 = arith.constant 0 : i32
    %c0_i32_0 = arith.constant 0 : i32
    return %arg0, %c0_i32 : i32, i32
  }
  func.func @transform_1(%arg0: i32) -> (i32, i32) {
    %c0_i32 = arith.constant 0 : i32
    %c0_i32_0 = arith.constant 0 : i32
    return %arg0, %c0_i32 : i32, i32
  }
}

</mosaic_0001>

<bundles_post_ra>
// kernel: tpu_custom_call.1
= control target key start
LH: loop header
LB: loop body
LE: loop exit
PB: predicated region body
PF: predicated region fallthrough
CT: control target
= control target key end

     0   :  { %6 = vsyncpa [#allocation3], 0  ;;  %s1987_s0 = inlined_call_operand.hbm [shape: f32[8,2048], index: 0, kind: input, shape index: {}]   ;;  %s1988_s1 = inlined_call_operand.hbm [shape: f32[8,2048], index: 1, kind: output, shape index: {}]  }
   0x1   :  { %7 = vsyncpa [#allocation4], 0  ;;  %s13_s8 = sshll.u32 %s1987_s0, 4  ;;  %s1160_s9 = smov [#allocation2]   ;;  %s14_s8 = int_to_ptr.hbm [resolvable:$true] %s13_s8 }
   0x2   :  { %s15_s10 = sshll.u32 %s1160_s9, 4  ;;  %s16_s10 = int_to_ptr.vmem [resolvable:$true] %s15_s10 }
   0x3   :  { %18 = dma.hbm_to_vmem [thread:$0]  %s14_s8, 2048, %s16_s10, [#allocation3]  }
   0x4   :  { %1156 = dma.done.wait [#allocation3], 2048  }
   0x5   :  { %1157 = vsyncadd [#allocation3], 4294965248  ;;  %v1180_v0 = vld [vmem:[#allocation2 + $0x10] sm:$0xff]  ;;  %v1182_v1 = vld [vmem:[#allocation2] sm:$0xff]  ;;  %s1161_s11 = smov 1   ;;  %s1162_s0 = smov 127   ;;  %v23_v26 = vlaneseq }
   0x6   :  { %444 = vrot.lane.b32.xlu1 %v1180_v0, %s1161_s11  ;;  %440 = vrot.lane.b32.xlu0 %v1182_v1, %s1161_s11  ;;  %v1188_v2 = vld [vmem:[#allocation2 + $0x20] sm:$0xff]  ;;  %v1192_v3 = vld [vmem:[#allocation2 + $0x18] sm:$0xff]  ;;  %v1194_v4 = vld [vmem:[#allocation2 + $0x8] sm:$0xff]  ;;  %v1303_v36 = vmul.f32 0.786986, %v1180_v0  ;;  %v1993_v60 = vmov 0.0  }
   0x7   :  { %448 = vrot.lane.b32.xlu2 %v1188_v2, %s1161_s11  ;;  %v1200_v5 = vld [vmem:[#allocation2 + $0x28] sm:$0xff]  ;;  %v1204_v6 = vld [vmem:[#allocation2 + $0x38] sm:$0xff]  ;;  %v1206_v7 = vld [vmem:[#allocation2 + $0x30] sm:$0xff]  ;;  %v1282_v28 = vand.u32 127, %v23_v26  ;;  %v537_v37 = vmul.f32 0.786986, %v1182_v1 }
   0x8   :  { %v1212_v8 = vld [vmem:[#allocation2 + $0x40] sm:$0xff]  ;;  %v1216_v9 = vld [vmem:[#allocation2 + $0x50] sm:$0xff]  ;;  %v1218_v10 = vld [vmem:[#allocation2 + $0x48] sm:$0xff]  ;;  %v1307_v38 = vmul.f32 0.786986, %v1192_v3  ;;  %s1164_s12 = smov 16  }
   0x9   :  { %v1224_v11 = vld [vmem:[#allocation2 + $0x58] sm:$0xff]  ;;  %v1228_v12 = vld [vmem:[#allocation2 + $0x68] sm:$0xff]  ;;  %v1230_v13 = vld [vmem:[#allocation2 + $0x60] sm:$0xff]  ;;  %v1289_v31 = vadd.s32 640, %v1282_v28  ;;  %v1292_v32 = vadd.s32 384, %v1282_v28  ;;  %v1295_v33 = vadd.s32 128, %v1282_v28 }
   0xa   :  { %v1236_v14 = vld [vmem:[#allocation2 + $0x70] sm:$0xff]  ;;  %v1240_v15 = vld [vmem:[#allocation2 + $0x78] sm:$0xff]  ;;  %v1298_v34 = vadd.s32 256, %v1282_v28  ;;  %v1311_v40 = vadd.s32 512, %v1282_v28  ;;  %v1315_v42 = vmul.f32 0.786986, %v1194_v4 }
   0xb   :  { %2003 = vst [vmem:[#allocation8_spill] sm:$0xff] %v1240_v15  ;;  %v1990_v39 = vand.u32 15, %v1289_v31  ;;  %v65_v41 = vand.u32 15, %v1292_v32  ;;  %v1318_v43 = vmul.f32 0.786986, %v1204_v6  ;;  %v1321_v44 = vadd.s32 1024, %v1282_v28 }
   0xc   :  { %2004 = vst [vmem:[#allocation9_spill] sm:$0xff] %v1292_v32  ;;  %v44_v47 = vand.u32 15, %v1282_v28  ;;  %v1329_v48 = vmul.f32 0.786986, %v1206_v7  ;;  %v51_v49 = vand.u32 15, %v1295_v33  ;;  %v58_v50 = vand.u32 15, %v1298_v34 }
   0xd   :  { %2005 = vst [vmem:[#allocation10_spill] sm:$0xff] %v1295_v33  ;;  %v1334_v51 = vadd.s32 768, %v1282_v28  ;;  %v1337_v52 = vmul.f32 0.786986, %v1188_v2  ;;  %v1340_v53 = vmul.f32 0.786986, %v1218_v10 }
   0xe   :  { %446 = vrot.lane.b32.xlu1 %v1192_v3, %s1161_s11  ;;  %442 = vrot.lane.b32.xlu0 %v1194_v4, %s1161_s11  ;;  %2006 = vst [vmem:[#allocation11_spill] sm:$0xff] %v1298_v34  ;;  %v1343_v54 = vmul.f32 0.786986, %v1200_v5  ;;  %vm494_vm0 = vcmp.ge.s32.totalorder %v1990_v39, 1  ;;  %v1991_v55 = vand.u32 15, %v1311_v40  ;;  %vm492_vm1 = vcmp.ge.s32.totalorder %v65_v41, 1 }
   0xf   :  { %450 = vrot.lane.b32.xlu2 %v1200_v5, %s1161_s11  ;;  %v1989_v56 = vand.u32 15, %v1321_v44  ;;  %v1350_v57 = vadd.s32 896, %v1282_v28  ;;  %vm618_vm2 = vcmp.lt.s32.totalorder %v44_v47, 15  ;;  %vm489_vm3 = vcmp.ge.s32.totalorder %v44_v47, 1  ;;  %s1165_s13 = smov 112   ;;  %s1166_s14 = smov [#allocation5]  }
  0x10   :  { %v1353_v58 = vmul.f32 0.786986, %v1212_v8  ;;  %vm490_vm4 = vcmp.ge.s32.totalorder %v51_v49, 1  ;;  %vm491_vm5 = vcmp.ge.s32.totalorder %v58_v50, 1  ;;  %v1992_v59 = vand.u32 15, %v1334_v51  ;;  %s1089_s15 = sshll.u32 %s1166_s14, 4  ;;  %s1090_s15 = int_to_ptr.vmem [resolvable:$true] %s1089_s15 }
  0x11   :  { %vm472_vm6 = vcmp.lt.s32.totalorder %v1282_v28, 1  ;;  %v510_v61 = vsel %vm494_vm0, 0.10650697, %v1993_v60  ;;  %v508_v62 = vsel %vm492_vm1, 0.10650697, %v1993_v60  ;;  %vm601_vm7 = vcmp.lt.s32.totalorder %v1282_v28, 127 }
  0x12   :  { %vm1362_vm8 = vcmp.ge.s32.totalorder %v1991_v55, 1  ;;  %vm1377_vm9 = vcmp.ge.s32.totalorder %v1989_v56, 1  ;;  %vm1388_vm10 = vcmp.ge.s32.totalorder %v1992_v59, 1  ;;  %v1393_v47 = vadd.s32 1408, %v1282_v28  ;;  %s1091_s18 = sshll.u32 %s1988_s1, 4  ;;  %s1092_s18 = int_to_ptr.hbm [resolvable:$true] %s1091_s18 }
  0x13   :  { %v1408_v59 = vadd.s32 1280, %v1282_v28  ;;  %vm621_vm11 = vcmp.lt.s32.totalorder %v65_v41, 15  ;;  %vm619_vm12 = vcmp.lt.s32.totalorder %v51_v49, 15  ;;  %vm620_vm13 = vcmp.lt.s32.totalorder %v58_v50, 15 }
  0x16   :  { %454 = vrot.lane.b32.xlu1 %v1204_v6, %s1161_s11  ;;  %452 = vrot.lane.b32.xlu0 %v1206_v7, %s1161_s11 }
  0x17   :  { %456 = vrot.lane.b32.xlu2 %v1212_v8, %s1161_s11 }
  0x1e   :  { %460 = vrot.lane.b32.xlu1 %v1216_v9, %s1161_s11  ;;  %458 = vrot.lane.b32.xlu0 %v1218_v10, %s1161_s11 }
  0x1f   :  { %462 = vrot.lane.b32.xlu2 %v1224_v11, %s1161_s11 }
  0x26   :  { %466 = vrot.lane.b32.xlu1 %v1228_v12, %s1161_s11  ;;  %464 = vrot.lane.b32.xlu0 %v1230_v13, %s1161_s11 }
  0x27   :  { %468 = vrot.lane.b32.xlu2 %v1236_v14, %s1161_s11 }
  0x2e   :  { %569 = vrot.lane.b32.xlu1 %v1182_v1, %s1162_s0  ;;  %470 = vrot.lane.b32.xlu0 %v1240_v15, %s1161_s11  ;;  %v634_v1 = vsel %vm618_vm2, 0.10650697, %v1993_v60 }
  0x2f   :  { %571 = vrot.lane.b32.xlu2 %v1194_v4, %s1162_s0  ;;  %v506_v4 = vsel %vm490_vm4, 0.10650697, %v1993_v60 }
  0x36   :  { %575 = vrot.lane.b32.xlu1 %v1192_v3, %s1162_s0  ;;  %573 = vrot.lane.b32.xlu0 %v1180_v0, %s1162_s0  ;;  %v1367_v0 = vadd.s32 1152, %v1282_v28 }
  0x37   :  { %577 = vrot.lane.b32.xlu2 %v1188_v2, %s1162_s0  ;;  %v505_v2 = vsel %vm489_vm3, 0.10650697, %v1993_v60 }
  0x38   :  { %v2000_v34 = vand.u32 15, %v1367_v0 }
  0x3a   :  { %vm1453_vm15 = vcmp.ge.s32.totalorder %v2000_v34, 1 }
  0x3e   :  { %581 = vrot.lane.b32.xlu1 %v1206_v7, %s1162_s0  ;;  %579 = vrot.lane.b32.xlu0 %v1200_v5, %s1162_s0  ;;  %v507_v5 = vsel %vm491_vm5, 0.10650697, %v1993_v60 }
  0x3f   :  { %583 = vrot.lane.b32.xlu2 %v1204_v6, %s1162_s0 }
  0x46   :  { %587 = vrot.lane.b32.xlu1 %v1218_v10, %s1162_s0  ;;  %585 = vrot.lane.b32.xlu0 %v1212_v8, %s1162_s0 }
  0x47   :  { %589 = vrot.lane.b32.xlu2 %v1216_v9, %s1162_s0 }
  0x4e   :  { %593 = vrot.lane.b32.xlu1 %v1230_v13, %s1162_s0  ;;  %591 = vrot.lane.b32.xlu0 %v1224_v11, %s1162_s0 }
  0x4f   :  { %595 = vrot.lane.b32.xlu2 %v1228_v12, %s1162_s0 }
  0x56   :  { %599 = vrot.lane.b32.xlu1 %v1240_v15, %s1162_s0  ;;  %597 = vrot.lane.b32.xlu0 %v1236_v14, %s1162_s0  ;;  %v2015_v15 = vand.u32 15, %v1350_v57 }
  0x58   :  { %vm1433_vm14 = vcmp.ge.s32.totalorder %v2015_v15, 1 }
  0x61   :  { %v1260_v16 = vpop.permute.xlu2 %448 }
  0x69   :  { %v1262_v17 = vpop.permute.xlu2 %450 }
  0x6a   :  { %v483_v32 = vsel %vm472_vm6, %v1260_v16, %v1262_v17 }
  0x71   :  { %v1264_v18 = vpop.permute.xlu2 %456 }
  0x78   :  { %v1266_v19 = vpop.permute.xlu1 %444  ;;  %v1268_v20 = vpop.permute.xlu0 %440 }
  0x79   :  { %v1274_v23 = vpop.permute.xlu2 %462 }
  0x80   :  { %v1270_v21 = vpop.permute.xlu1 %446  ;;  %v1272_v22 = vpop.permute.xlu0 %442 }
  0x81   :  { %v1280_v27 = vpop.permute.xlu2 %468  ;;  %v487_v55 = vsel %vm472_vm6, %v1268_v20, %v1272_v22  ;;  %v485_v33 = vsel %vm472_vm6, %v1266_v19, %v1270_v21  ;;  %v484_v15 = vsel %vm472_vm6, %v1270_v21, %v1260_v16 }
  0x82   :  { %v524_v50 = vmul.f32 %v508_v62, %v485_v33 }
  0x88   :  { %v1276_v24 = vpop.permute.xlu1 %454  ;;  %v1278_v25 = vpop.permute.xlu0 %452 }
  0x89   :  { %v1300_v35 = vpop.permute.xlu2 %571 }
  0x90   :  { %v1284_v29 = vpop.permute.xlu1 %460  ;;  %v1286_v30 = vpop.permute.xlu0 %458 }
  0x91   :  { %v1371_v3 = vpop.permute.xlu2 %577 }
  0x98   :  { %v1323_v45 = vpop.permute.xlu1 %466  ;;  %v1325_v46 = vpop.permute.xlu0 %464 }
  0x99   :  { %v1469_v34 = vpop.permute.xlu2 %583 }
  0xa0   :  { %v1382_v8 = vpop.permute.xlu1 %569  ;;  %v1384_v10 = vpop.permute.xlu0 %470 }
  0xa1   :  { %2011 = vst [vmem:[#allocation12_spill] sm:$0xff] %v1382_v8  ;;  %v616_v56 = vsel %vm601_vm7, %v1382_v8, %v1300_v35  ;;  %v488_v39 = vsel %vm472_vm6, %v1384_v10, %v1268_v20  ;;  %v486_v20 = vsel %vm472_vm6, %v1272_v22, %v1266_v19  ;;  %v526_v22 = vmul.f32 %v510_v61, %v483_v32 }
  0xa2   :  { %v650_v7 = vmul.f32 %v634_v1, %v616_v56  ;;  %v521_v60 = vmul.f32 %v505_v2, %v488_v39  ;;  %v2014_v39 = vmov 0.0   ;;  %v522_v1 = vmul.f32 %v506_v4, %v487_v55 }
  0xa3   :  { %v509_v56 = vsel %vm1362_vm8, 0.10650697, %v2014_v39  ;;  %v1429_v2 = vsel %vm1377_vm9, 0.10650697, %v2014_v39  ;;  %v511_v41 = vsel %vm1388_vm10, 0.10650697, %v2014_v39 }
  0xa4   :  { %v553_v8 = vadd.f32 %v537_v37, %v521_v60  ;;  %v523_v37 = vmul.f32 %v507_v5, %v486_v20  ;;  %v637_v55 = vsel %vm621_vm11, 0.10650697, %v2014_v39  ;;  %v635_v60 = vsel %vm619_vm12, 0.10650697, %v2014_v39 }
  0xa5   :  { %v636_v63 = vsel %vm620_vm13, 0.10650697, %v2014_v39  ;;  %v2001_v32 = vand.u32 15, %v1393_v47  ;;  %v554_v5 = vadd.f32 %v1315_v42, %v522_v1  ;;  %v556_v42 = vadd.f32 %v1307_v38, %v524_v50 }
  0xa6   :  { %v1440_v49 = vadd.f32 %v650_v7, %v553_v8  ;;  %v555_v7 = vadd.f32 %v1303_v36, %v523_v37  ;;  %v482_v1 = vsel %vm472_vm6, %v1262_v17, %v1278_v25  ;;  %v2020_v61 = vand.u32 15, %v1334_v51 }
  0xa7   :  { %v2023_v38 = vand.u32 15, %v1311_v40  ;;  %v2024_v50 = vand.u32 15, %v1289_v31  ;;  %v558_v17 = vadd.f32 %v1343_v54, %v526_v22  ;;  %vm1499_vm3 = vcmp.ge.s32.totalorder %v2001_v32, 1 }
  0xa8   :  { %v576_v33 = vpop.permute.xlu1 %575  ;;  %v574_v62 = vpop.permute.xlu0 %573  ;;  %682 = vrot.lane.b32.xlu2 %v1440_v49, %s1164_s12  ;;  %vm1481_vm0 = vcmp.lt.s32.totalorder %v2020_v61, 15  ;;  %v2027_v61 = vand.u32 15, %v1408_v59  ;;  %v514_v54 = vsel %vm1453_vm15, 0.10650697, %v2014_v39  ;;  %v527_v22 = vmul.f32 %v511_v41, %v482_v1 }
  0xa9   :  { %v613_v16 = vsel %vm601_vm7, %v576_v33, %v1371_v3  ;;  %v614_v21 = vsel %vm601_vm7, %v574_v62, %v576_v33  ;;  %v615_v6 = vsel %vm601_vm7, %v1300_v35, %v574_v62  ;;  %v1477_v33 = vadd.s32 1536, %v1282_v28 }
  0xaa   :  { %v653_v8 = vmul.f32 %v637_v55, %v613_v16  ;;  %v651_v26 = vmul.f32 %v635_v60, %v615_v6  ;;  %v652_v20 = vmul.f32 %v636_v63, %v614_v21  ;;  %vm622_vm1 = vcmp.lt.s32.totalorder %v2023_v38, 15 }
  0xab   :  { %vm623_vm2 = vcmp.lt.s32.totalorder %v2024_v50, 15  ;;  %v525_v55 = vmul.f32 %v509_v56, %v484_v15  ;;  %v512_v60 = vsel %vm1433_vm14, 0.10650697, %v2014_v39  ;;  %vm1505_vm4 = vcmp.ge.s32.totalorder %v2027_v61, 1 }
  0xac   :  { %v1485_v36 = vadd.f32 %v651_v26, %v554_v5  ;;  %v1487_v37 = vadd.f32 %v652_v20, %v555_v7  ;;  %v1513_v56 = vadd.s32 1792, %v1282_v28  ;;  %v1519_v19 = vadd.f32 %v653_v8, %v556_v42 }
  0xad   :  { %v640_v15 = vsel %vm1481_vm0, 0.10650697, %v2014_v39  ;;  %v638_v5 = vsel %vm622_vm1, 0.10650697, %v2014_v39  ;;  %v639_v4 = vsel %vm623_vm2, 0.10650697, %v2014_v39  ;;  %v480_v16 = vsel %vm472_vm6, %v1276_v24, %v1264_v18 }
  0xae   :  { %684 = vrot.lane.b32.xlu0 %v1485_v36, %s1164_s12  ;;  %686 = vrot.lane.b32.xlu1 %v1487_v37, %s1164_s12  ;;  %v1531_v21 = vadd.s32 1664, %v1282_v28  ;;  %v128_v6 = vand.u32 15, %v1477_v33  ;;  %v1535_v41 = vadd.s32 1920, %v1282_v28  ;;  %v557_v26 = vadd.f32 %v1337_v52, %v525_v55 }
  0xaf   :  { %v481_v35 = vsel %vm472_vm6, %v1278_v25, %v1276_v24  ;;  %v529_v52 = vmul.f32 %v1429_v2, %v480_v16  ;;  %v559_v55 = vadd.f32 %v1329_v48, %v527_v22  ;;  %v2030_v32 = vand.u32 15, %v1367_v0  ;;  %v1568_v25 = vpop.permute.xlu2 %589 }
  0xb0   :  { %v582_v7 = vpop.permute.xlu1 %581  ;;  %v580_v8 = vpop.permute.xlu0 %579  ;;  %688 = vrot.lane.b32.xlu2 %v1519_v19, %s1164_s12  ;;  %v2033_v2 = vand.u32 15, %v1350_v57  ;;  %v2034_v48 = vand.u32 15, %v1321_v44  ;;  %v528_v22 = vmul.f32 %v512_v60, %v481_v35  ;;  %vm501_vm10 = vcmp.ge.s32.totalorder %v128_v6, 1 }
  0xb1   :  { %v610_v20 = vsel %vm601_vm7, %v582_v7, %v1469_v34  ;;  %v611_v42 = vsel %vm601_vm7, %v580_v8, %v582_v7  ;;  %v612_v1 = vsel %vm601_vm7, %v1371_v3, %v580_v8  ;;  %v479_v7 = vsel %vm472_vm6, %v1264_v18, %v1286_v30 }
  0xb2   :  { %v656_v38 = vmul.f32 %v640_v15, %v610_v20  ;;  %v654_v50 = vmul.f32 %v638_v5, %v612_v1  ;;  %v655_v61 = vmul.f32 %v639_v4, %v611_v42  ;;  %vm1560_vm5 = vcmp.lt.s32.totalorder %v2030_v32, 15 }
  0xb3   :  { %vm625_vm8 = vcmp.lt.s32.totalorder %v2033_v2, 15  ;;  %vm626_vm9 = vcmp.lt.s32.totalorder %v2034_v48, 15  ;;  %v548_v18 = vmul.f32 0.786986, %v1224_v11  ;;  %v516_v32 = vsel %vm1499_vm3, 0.10650697, %v2014_v39 }
  0xb4   :  { %v1564_v8 = vadd.f32 %v654_v50, %v557_v26  ;;  %v1566_v24 = vadd.f32 %v655_v61, %v558_v17  ;;  %v515_v17 = vsel %vm1505_vm4, 0.10650697, %v2014_v39  ;;  %v142_v15 = vand.u32 15, %v1513_v56 }
  0xb5   :  { %v135_v5 = vand.u32 15, %v1531_v21  ;;  %v1587_v11 = vadd.f32 %v656_v38, %v559_v55  ;;  %v530_v60 = vmul.f32 %v514_v54, %v479_v7  ;;  %v643_v63 = vsel %vm1560_vm5, 0.10650697, %v2014_v39 }
  0xb6   :  { %690 = vrot.lane.b32.xlu0 %v1564_v8, %s1164_s12  ;;  %692 = vrot.lane.b32.xlu1 %v1566_v24, %s1164_s12  ;;  %v641_v62 = vsel %vm625_vm8, 0.10650697, %v2014_v39  ;;  %v642_v4 = vsel %vm626_vm9, 0.10650697, %v2014_v39  ;;  %v561_v16 = vadd.f32 %v1353_v58, %v529_v52  ;;  %v477_v26 = vsel %vm472_vm6, %v1284_v29, %v1274_v23 }
  0xb7   :  { %v517_v20 = vsel %vm501_vm10, 0.10650697, %v2014_v39  ;;  %v149_v42 = vand.u32 15, %v1535_v41  ;;  %v560_v35 = vadd.f32 %v1318_v43, %v528_v22  ;;  %v478_v61 = vsel %vm472_vm6, %v1286_v30, %v1284_v29 }
  0xb8   :  { %v588_v54 = vpop.permute.xlu1 %587  ;;  %v586_v1 = vpop.permute.xlu0 %585  ;;  %694 = vrot.lane.b32.xlu2 %v1587_v11, %s1164_s12  ;;  %v532_v43 = vmul.f32 %v516_v32, %v477_v26  ;;  %v562_v3 = vadd.f32 %v1340_v53, %v530_v60  ;;  %v476_v2 = vsel %vm472_vm6, %v1274_v23, %v1325_v46  ;;  %vm630_vm11 = vcmp.lt.s32.totalorder %v128_v6, 15 }
  0xb9   :  { %v607_v58 = vsel %vm601_vm7, %v588_v54, %v1568_v25  ;;  %v608_v38 = vsel %vm601_vm7, %v586_v1, %v588_v54  ;;  %v609_v50 = vsel %vm601_vm7, %v1469_v34, %v586_v1  ;;  %v2035_v22 = vand.u32 15, %v1408_v59  ;;  %v596_v23 = vpop.permute.xlu2 %595 }
  0xba   :  { %v659_v52 = vmul.f32 %v643_v63, %v607_v58  ;;  %v657_v55 = vmul.f32 %v641_v62, %v609_v50  ;;  %v658_v7 = vmul.f32 %v642_v4, %v608_v38  ;;  %v2036_v29 = vand.u32 15, %v1393_v47 }
  0xbb   :  { %vm628_vm12 = vcmp.lt.s32.totalorder %v2035_v22, 15  ;;  %v547_v30 = vmul.f32 0.786986, %v1216_v9  ;;  %v531_v32 = vmul.f32 %v515_v17, %v478_v61  ;;  %vm503_vm14 = vcmp.ge.s32.totalorder %v142_v15, 1 }
  0xbc   :  { %v1621_v48 = vadd.f32 %v657_v55, %v560_v35  ;;  %v1623_v34 = vadd.f32 %v658_v7, %v561_v16  ;;  %vm629_vm13 = vcmp.lt.s32.totalorder %v2036_v29, 15  ;;  %v549_v53 = vmul.f32 0.786986, %v1230_v13  ;;  %v2039_v29 = vld [vmem:[#allocation8_spill] sm:$0xff] }
  0xbd   :  { %v1637_v6 = vadd.f32 %v659_v52, %v562_v3  ;;  %v533_v60 = vmul.f32 %v517_v20, %v476_v2  ;;  %v646_v63 = vsel %vm630_vm11, 0.10650697, %v2014_v39  ;;  %v644_v9 = vsel %vm628_vm12, 0.10650697, %v2014_v39 }
  0xbe   :  { %696 = vrot.lane.b32.xlu0 %v1621_v48, %s1164_s12  ;;  %698 = vrot.lane.b32.xlu1 %v1623_v34, %s1164_s12  ;;  %v645_v17 = vsel %vm629_vm13, 0.10650697, %v2014_v39  ;;  %v564_v62 = vadd.f32 %v548_v18, %v532_v43  ;;  %v519_v4 = vsel %vm503_vm14, 0.10650697, %v2014_v39  ;;  %vm502_vm15 = vcmp.ge.s32.totalorder %v135_v5, 1 }
  0xbf   :  { %vm1645_vm0 = vcmp.ge.s32.totalorder %v149_v42, 1  ;;  %v563_v20 = vadd.f32 %v547_v30, %v531_v32  ;;  %v474_v35 = vsel %vm472_vm6, %v1323_v45, %v1280_v27  ;;  %v518_v61 = vsel %vm502_vm15, 0.10650697, %v2014_v39 }
  0xc0   :  { %v594_v16 = vpop.permute.xlu1 %593  ;;  %v592_v26 = vpop.permute.xlu0 %591  ;;  %700 = vrot.lane.b32.xlu2 %v1637_v6, %s1164_s12  ;;  %v475_v52 = vsel %vm472_vm6, %v1325_v46, %v1323_v45  ;;  %v565_v55 = vadd.f32 %v549_v53, %v533_v60  ;;  %vm633_vm1 = vcmp.lt.s32.totalorder %v149_v42, 15  ;;  %vm631_vm2 = vcmp.lt.s32.totalorder %v135_v5, 15  ;;  %v2040_v53 = vld [vmem:[#allocation12_spill] sm:$0xff] }
  0xc1   :  { %v604_v54 = vsel %vm601_vm7, %v594_v16, %v596_v23  ;;  %v605_v18 = vsel %vm601_vm7, %v592_v26, %v594_v16  ;;  %v606_v1 = vsel %vm601_vm7, %v1568_v25, %v592_v26  ;;  %vm632_vm3 = vcmp.lt.s32.totalorder %v142_v15, 15 }
  0xc2   :  { %v662_v58 = vmul.f32 %v646_v63, %v604_v54  ;;  %v660_v38 = vmul.f32 %v644_v9, %v606_v1  ;;  %v661_v50 = vmul.f32 %v645_v17, %v605_v18  ;;  %v551_v43 = vmul.f32 0.786986, %v1236_v14 }
  0xc3   :  { %v535_v3 = vmul.f32 %v519_v4, %v474_v35  ;;  %v520_v2 = vsel %vm1645_vm0, 0.10650697, %v2014_v39  ;;  %v473_v45 = vsel %vm472_vm6, %v1280_v27, %v1384_v10  ;;  %v550_v46 = vmul.f32 0.786986, %v1228_v12 }
  0xc4   :  { %v1667_v7 = vadd.f32 %v660_v38, %v563_v20  ;;  %v1669_v25 = vadd.f32 %v661_v50, %v564_v62  ;;  %v534_v42 = vmul.f32 %v518_v61, %v475_v52  ;;  %v1688_v14 = vadd.f32 %v662_v58, %v565_v55 }
  0xc5   :  { %v649_v15 = vsel %vm633_vm1, 0.10650697, %v2014_v39  ;;  %v647_v5 = vsel %vm631_vm2, 0.10650697, %v2014_v39  ;;  %v648_v22 = vsel %vm632_vm3, 0.10650697, %v2014_v39  ;;  %v536_v27 = vmul.f32 %v520_v2, %v473_v45 }
  0xc6   :  { %702 = vrot.lane.b32.xlu0 %v1667_v7, %s1164_s12  ;;  %704 = vrot.lane.b32.xlu1 %v1669_v25, %s1164_s12  ;;  %v552_v30 = vmul.f32 0.786986, %v2039_v29  ;;  %v567_v32 = vadd.f32 %v551_v43, %v535_v3  ;;  %v566_v17 = vadd.f32 %v550_v46, %v534_v42  ;;  %v1750_v46 = vmul.f32 0.786986, %v1440_v49 }
  0xc7   :  { %v782_v42 = vmul.f32 0.786986, %v1519_v19  ;;  %v278_v29 = vand.u32 255, %v1334_v51  ;;  %vm714_vm6 = vcmp.lt.s32.totalorder %v1282_v28, 16  ;;  %vm843_vm12 = vcmp.lt.s32.totalorder %v1282_v28, 112 }
  0xc8   :  { %v600_v10 = vpop.permute.xlu1 %599  ;;  %v598_v12 = vpop.permute.xlu0 %597  ;;  %706 = vrot.lane.b32.xlu2 %v1688_v14, %s1164_s12  ;;  %v568_v16 = vadd.f32 %v552_v30, %v536_v27  ;;  %v781_v30 = vmul.f32 0.786986, %v1487_v37  ;;  %v1758_v27 = vmul.f32 0.786986, %v1587_v11 }
  0xc9   :  { %v617_v60 = vsel %vm601_vm7, %v600_v10, %v2040_v53  ;;  %v602_v63 = vsel %vm601_vm7, %v598_v12, %v600_v10  ;;  %v603_v9 = vsel %vm601_vm7, %v596_v23, %v598_v12  ;;  %v264_v10 = vand.u32 255, %v1311_v40 }
  0xca   :  { %v665_v62 = vmul.f32 %v649_v15, %v617_v60  ;;  %v663_v4 = vmul.f32 %v647_v5, %v603_v9  ;;  %v664_v13 = vmul.f32 %v648_v22, %v602_v63  ;;  %v2042_v15 = vld [vmem:[#allocation11_spill] sm:$0xff]  ;;  %v780_v22 = vmul.f32 0.786986, %v1485_v36 }
  0xcb   :  { %v250_v5 = vand.u32 255, %v2042_v15  ;;  %v236_v12 = vand.u32 255, %v1282_v28  ;;  %v1777_v40 = vmul.f32 0.786986, %v1621_v48  ;;  %vm737_vm4 = vcmp.ge.s32.totalorder %v278_v29, 16  ;;  %v2044_v15 = vld [vmem:[#allocation9_spill] sm:$0xff] }
  0xcc   :  { %v1703_v26 = vadd.f32 %v663_v4, %v566_v17  ;;  %v1705_v20 = vadd.f32 %v664_v13, %v567_v32  ;;  %v1711_v54 = vadd.f32 %v665_v62, %v568_v16  ;;  %vm735_vm5 = vcmp.ge.s32.totalorder %v264_v10, 16 }
  0xcd   :  { %vm733_vm7 = vcmp.ge.s32.totalorder %v250_v5, 16  ;;  %vm731_vm8 = vcmp.ge.s32.totalorder %v236_v12, 16  ;;  %v753_v63 = vsel %vm737_vm4, 0.10650697, %v2014_v39  ;;  %v751_v17 = vsel %vm735_vm5, 0.10650697, %v2014_v39 }
  0xce   :  { %2041 = vst [vmem:[#allocation8_spill] sm:$0xff] %v1705_v20  ;;  %708 = vrot.lane.b32.xlu0 %v1703_v26, %s1164_s12  ;;  %710 = vrot.lane.b32.xlu1 %v1705_v20, %s1164_s12  ;;  %v749_v60 = vsel %vm733_vm7, 0.10650697, %v2014_v39  ;;  %v257_v5 = vand.u32 255, %v2044_v15 }
  0xd0   :  { %712 = vrot.lane.b32.xlu2 %v1711_v54, %s1164_s12  ;;  %vm863_vm14 = vcmp.lt.s32.totalorder %v257_v5, 240 }
  0xd6   :  { %813 = vrot.lane.b32.xlu1 %v1485_v36, %s1165_s13  ;;  %811 = vrot.lane.b32.xlu0 %v1440_v49, %s1165_s13  ;;  %v783_v49 = vmul.f32 0.786986, %v1564_v8  ;;  %v292_v36 = vand.u32 255, %v1321_v44  ;;  %v320_v44 = vand.u32 255, %v1477_v33 }
  0xd8   :  { %815 = vrot.lane.b32.xlu2 %v1487_v37, %s1165_s13  ;;  %v1774_v37 = vmul.f32 0.786986, %v1637_v6  ;;  %vm739_vm9 = vcmp.ge.s32.totalorder %v292_v36, 16  ;;  %vm743_vm10 = vcmp.ge.s32.totalorder %v320_v44, 16 }
  0xd9   :  { %v755_v62 = vsel %vm739_vm9, 0.10650697, %v2014_v39 }
  0xde   :  { %819 = vrot.lane.b32.xlu1 %v1564_v8, %s1165_s13  ;;  %817 = vrot.lane.b32.xlu0 %v1519_v19, %s1165_s13  ;;  %v1766_v19 = vmul.f32 0.786986, %v1566_v24  ;;  %v1784_v8 = vmul.f32 0.786986, %v1688_v14 }
  0xe0   :  { %821 = vrot.lane.b32.xlu2 %v1566_v24, %s1165_s13  ;;  %v2043_v24 = vld [vmem:[#allocation10_spill] sm:$0xff] }
  0xe6   :  { %825 = vrot.lane.b32.xlu1 %v1621_v48, %s1165_s13  ;;  %823 = vrot.lane.b32.xlu0 %v1587_v11, %s1165_s13  ;;  %v1780_v11 = vmul.f32 0.786986, %v1623_v34  ;;  %v1789_v48 = vmul.f32 0.786986, %v1667_v7 }
  0xe8   :  { %827 = vrot.lane.b32.xlu2 %v1623_v34, %s1165_s13  ;;  %v1792_v34 = vmul.f32 0.786986, %v1669_v25 }
  0xee   :  { %831 = vrot.lane.b32.xlu1 %v1667_v7, %s1165_s13  ;;  %829 = vrot.lane.b32.xlu0 %v1637_v6, %s1165_s13  ;;  %v243_v6 = vand.u32 255, %v2043_v24  ;;  %v747_v7 = vsel %vm731_vm8, 0.10650697, %v2014_v39 }
  0xf0   :  { %833 = vrot.lane.b32.xlu2 %v1669_v25, %s1165_s13  ;;  %vm861_vm11 = vcmp.lt.s32.totalorder %v243_v6, 240 }
  0xf1   :  { %v877_v12 = vsel %vm861_vm11, 0.10650697, %v2014_v39 }
  0xf6   :  { %837 = vrot.lane.b32.xlu1 %v1703_v26, %s1165_s13  ;;  %835 = vrot.lane.b32.xlu0 %v1688_v14, %s1165_s13  ;;  %v306_v14 = vand.u32 255, %v1408_v59 }
  0xf8   :  { %839 = vrot.lane.b32.xlu2 %v1705_v20, %s1165_s13  ;;  %vm741_vm13 = vcmp.ge.s32.totalorder %v306_v14, 16  ;;  %v334_v14 = vand.u32 255, %v1513_v56 }
  0xfa   :  { %vm1897_vm1 = vcmp.ge.s32.totalorder %v334_v14, 16 }
  0xfe   :  { %841 = vrot.lane.b32.xlu0 %v1711_v54, %s1165_s13 }
 0x102   :  { %v683_v23 = vpop.permute.xlu2 %682 }
 0x10a   :  { %v689_v18 = vpop.permute.xlu2 %688 }
 0x112   :  { %v1731_v1 = vpop.permute.xlu2 %694 }
 0x11a   :  { %v1733_v38 = vpop.permute.xlu2 %700 }
 0x120   :  { %v687_v35 = vpop.permute.xlu1 %686  ;;  %v685_v58 = vpop.permute.xlu0 %684 }
 0x121   :  { %v727_v9 = vsel %vm714_vm6, %v687_v35, %v689_v18  ;;  %v729_v33 = vsel %vm714_vm6, %v683_v23, %v685_v58  ;;  %v728_v25 = vsel %vm714_vm6, %v685_v58, %v687_v35 }
 0x122   :  { %v1737_v52 = vpop.permute.xlu2 %706  ;;  %v766_v29 = vmul.f32 0.10650697, %v727_v9  ;;  %v764_v35 = vmul.f32 0.10650697, %v729_v33  ;;  %v765_v10 = vmul.f32 %v749_v60, %v728_v25  ;;  %v1832_v60 = vsel %vm741_vm13, 0.10650697, %v2014_v39 }
 0x124   :  { %v798_v33 = vadd.f32 %v782_v42, %v766_v29  ;;  %v796_v25 = vadd.f32 %v780_v22, %v764_v35 }
 0x128   :  { %v1735_v50 = vpop.permute.xlu1 %692  ;;  %v691_v61 = vpop.permute.xlu0 %690 }
 0x129   :  { %v726_v59 = vsel %vm714_vm6, %v689_v18, %v691_v61  ;;  %v724_v18 = vsel %vm714_vm6, %v1735_v50, %v1731_v1  ;;  %v725_v36 = vsel %vm714_vm6, %v691_v61, %v1735_v50  ;;  %v285_v61 = vand.u32 255, %v1350_v57 }
 0x12a   :  { %v1743_v3 = vpop.permute.xlu2 %712  ;;  %v767_v44 = vmul.f32 %v751_v17, %v726_v59  ;;  %v797_v17 = vadd.f32 %v781_v30, %v765_v10  ;;  %v768_v59 = vmul.f32 0.10650697, %v725_v36 }
 0x12b   :  { %v730_v4 = vsel %vm714_vm6, %v1743_v3, %v683_v23  ;;  %v1822_v23 = vsel %vm743_vm10, 0.10650697, %v2014_v39  ;;  %vm1862_vm15 = vcmp.lt.s32.totalorder %v285_v61, 240 }
 0x12c   :  { %v763_v24 = vmul.f32 %v747_v7, %v730_v4  ;;  %v769_v7 = vmul.f32 %v753_v63, %v724_v18  ;;  %v799_v15 = vadd.f32 %v783_v49, %v767_v44  ;;  %v271_v49 = vand.u32 255, %v1289_v31 }
 0x12d   :  { %v800_v18 = vadd.f32 %v1766_v19, %v768_v59 }
 0x12e   :  { %v795_v56 = vadd.f32 %v1750_v46, %v763_v24  ;;  %v801_v10 = vadd.f32 %v1758_v27, %v769_v7  ;;  %v883_v27 = vsel %vm1862_vm15, 0.10650697, %v2014_v39  ;;  %vm865_vm0 = vcmp.lt.s32.totalorder %v271_v49, 240 }
 0x130   :  { %v1739_v55 = vpop.permute.xlu1 %698  ;;  %v1741_v43 = vpop.permute.xlu0 %696 }
 0x131   :  { %v723_v50 = vsel %vm714_vm6, %v1731_v1, %v1741_v43  ;;  %v721_v42 = vsel %vm714_vm6, %v1739_v55, %v1733_v38  ;;  %v722_v57 = vsel %vm714_vm6, %v1741_v43, %v1739_v55 }
 0x132   :  { %v1762_v32 = vpop.permute.xlu2 %815  ;;  %v770_v1 = vmul.f32 0.10650697, %v723_v50  ;;  %v771_v24 = vmul.f32 %v755_v62, %v722_v57 }
 0x134   :  { %v802_v50 = vadd.f32 %v1777_v40, %v770_v1 }
 0x138   :  { %v1745_v2 = vpop.permute.xlu1 %704  ;;  %v1747_v45 = vpop.permute.xlu0 %702 }
 0x139   :  { %v720_v40 = vsel %vm714_vm6, %v1733_v38, %v1747_v45 }
 0x13a   :  { %v1815_v58 = vpop.permute.xlu2 %821 }
 0x140   :  { %v1769_v53 = vpop.permute.xlu1 %710  ;;  %v1771_v51 = vpop.permute.xlu0 %708 }
 0x142   :  { %v1870_v36 = vpop.permute.xlu2 %827 }
 0x148   :  { %v814_v13 = vpop.permute.xlu1 %813  ;;  %v1812_v16 = vpop.permute.xlu0 %811 }
 0x149   :  { %v857_v6 = vsel %vm843_vm12, %v814_v13, %v1762_v32  ;;  %v858_v9 = vsel %vm843_vm12, %v1812_v16, %v814_v13  ;;  %v879_v13 = vsel %vm863_vm14, 0.10650697, %v2014_v39 }
 0x14a   :  { %v893_v4 = vmul.f32 %v877_v12, %v857_v6  ;;  %v892_v20 = vmul.f32 0.10650697, %v858_v9  ;;  %v772_v12 = vmul.f32 0.10650697, %v721_v42 }
 0x14c   :  { %v1866_v55 = vadd.f32 %v893_v4, %v796_v25  ;;  %v1872_v44 = vadd.f32 %v892_v20, %v795_v56  ;;  %v718_v25 = vsel %vm714_vm6, %v1745_v2, %v1737_v52  ;;  %v719_v20 = vsel %vm714_vm6, %v1747_v45, %v1745_v2 }
 0x14d   :  { %v881_v2 = vsel %vm865_vm0, 0.10650697, %v2014_v39  ;;  %v804_v49 = vadd.f32 %v1774_v37, %v772_v12  ;;  %v775_v29 = vmul.f32 %v1822_v23, %v718_v25  ;;  %v717_v23 = vsel %vm714_vm6, %v1737_v52, %v1771_v51 }
 0x14e   :  { %v959_v19 = vmul.f32 0.10650697, %v1866_v55  ;;  %v958_v61 = vmul.f32 0.10650697, %v1872_v44 }
 0x150   :  { %v820_v22 = vpop.permute.xlu1 %819  ;;  %v818_v30 = vpop.permute.xlu0 %817 }
 0x151   :  { %v854_v46 = vsel %vm843_vm12, %v820_v22, %v1815_v58  ;;  %v855_v63 = vsel %vm843_vm12, %v818_v30, %v820_v22  ;;  %v856_v5 = vsel %vm843_vm12, %v1762_v32, %v818_v30  ;;  %v773_v22 = vmul.f32 %v1832_v60, %v720_v40  ;;  %v1914_v60 = vpop.permute.xlu2 %833 }
 0x152   :  { %v896_v43 = vmul.f32 0.10650697, %v854_v46  ;;  %v894_v35 = vmul.f32 0.10650697, %v856_v5  ;;  %v895_v31 = vmul.f32 %v879_v13, %v855_v63  ;;  %v299_v13 = vand.u32 255, %v1367_v0 }
 0x153   :  { %v803_v46 = vadd.f32 %v1780_v11, %v771_v24  ;;  %v805_v37 = vadd.f32 %v1789_v48, %v773_v22 }
 0x154   :  { %v912_v32 = vadd.f32 %v896_v43, %v799_v15  ;;  %v910_v6 = vadd.f32 %v894_v35, %v797_v17  ;;  %v911_v9 = vadd.f32 %v895_v31, %v798_v33  ;;  %v327_v31 = vand.u32 255, %v1531_v21 }
 0x155   :  { %vm869_vm2 = vcmp.lt.s32.totalorder %v299_v13, 240  ;;  %v792_v13 = vmul.f32 0.786986, %v1703_v26  ;;  %v716_v26 = vsel %vm714_vm6, %v1771_v51, %v1769_v53 }
 0x156   :  { %v976_v62 = vmul.f32 0.786986, %v912_v32  ;;  %v1887_v33 = vmul.f32 0.10650697, %v910_v6  ;;  %v974_v17 = vmul.f32 0.786986, %v910_v6 }
 0x157   :  { %v975_v7 = vmul.f32 0.786986, %v911_v9  ;;  %v962_v59 = vmul.f32 0.10650697, %v912_v32  ;;  %v774_v32 = vmul.f32 0.10650697, %v719_v20 }
 0x158   :  { %v992_v4 = vadd.f32 %v976_v62, %v1887_v33  ;;  %v826_v15 = vpop.permute.xlu1 %825  ;;  %v824_v56 = vpop.permute.xlu0 %823  ;;  %v990_v57 = vadd.f32 %v974_v17, %v958_v61  ;;  %v1918_v12 = vmul.f32 0.10650697, %v911_v9  ;;  %v885_v20 = vsel %vm869_vm2, 0.10650697, %v2014_v39 }
 0x159   :  { %v991_v1 = vadd.f32 %v975_v7, %v959_v19  ;;  %v851_v38 = vsel %vm843_vm12, %v826_v15, %v1870_v36  ;;  %v852_v45 = vsel %vm843_vm12, %v824_v56, %v826_v15  ;;  %v853_v0 = vsel %vm843_vm12, %v1815_v58, %v824_v56 }
 0x15a   :  { %v899_v30 = vmul.f32 %v883_v27, %v851_v38  ;;  %v898_v14 = vmul.f32 0.10650697, %v852_v45  ;;  %v1054_v63 = vadd.f32 %v990_v57, %v962_v59  ;;  %v897_v5 = vmul.f32 %v881_v2, %v853_v0 }
 0x15b   :  { %v313_v58 = vand.u32 255, %v1393_v47  ;;  %vm1925_vm3 = vcmp.lt.s32.totalorder %v327_v31, 240  ;;  %v761_v56 = vsel %vm1897_vm1, 0.10650697, %v2014_v39  ;;  %v776_v57 = vmul.f32 0.10650697, %v717_v23 }
 0x15c   :  { %v915_v43 = vadd.f32 %v899_v30, %v802_v50  ;;  %v914_v35 = vadd.f32 %v898_v14, %v801_v10  ;;  %1070 = vst [vmem:[#allocation5 + $0x10] sm:$0xff] %v1054_v63  ;;  %v913_v6 = vadd.f32 %v897_v5, %v800_v18  ;;  %v806_v22 = vadd.f32 %v1792_v34, %v774_v32 }
 0x15d   :  { %vm1938_vm7 = vcmp.lt.s32.totalorder %v313_v58, 240  ;;  %v889_v30 = vsel %vm1925_vm3, 0.10650697, %v2014_v39  ;;  %v341_v0 = vand.u32 255, %v1535_v41  ;;  %v808_v34 = vadd.f32 %v792_v13, %v776_v57 }
 0x15e   :  { %v979_v11 = vmul.f32 0.786986, %v915_v43  ;;  %v964_v24 = vmul.f32 0.10650697, %v914_v35  ;;  %v963_v21 = vmul.f32 0.10650697, %v913_v6  ;;  %v715_v23 = vsel %vm714_vm6, %v1769_v53, %v1743_v3 }
 0x15f   :  { %v977_v10 = vmul.f32 0.786986, %v913_v6  ;;  %v978_v50 = vmul.f32 0.786986, %v914_v35  ;;  %v965_v25 = vmul.f32 0.10650697, %v915_v43 }
 0x160   :  { %v1056_v27 = vadd.f32 %v992_v4, %v964_v24  ;;  %v832_v18 = vpop.permute.xlu1 %831  ;;  %v830_v47 = vpop.permute.xlu0 %829  ;;  %v995_v62 = vadd.f32 %v979_v11, %v963_v21  ;;  %v1055_v40 = vadd.f32 %v991_v1, %v963_v21  ;;  %v807_v1 = vadd.f32 %v1784_v8, %v775_v29 }
 0x161   :  { %v993_v9 = vadd.f32 %v977_v10, %v1918_v12  ;;  %v994_v19 = vadd.f32 %v978_v50, %v962_v59  ;;  %v848_v52 = vsel %vm843_vm12, %v832_v18, %v1914_v60  ;;  %v849_v61 = vsel %vm843_vm12, %v830_v47, %v832_v18  ;;  %v840_v8 = vpop.permute.xlu2 %839 }
 0x162   :  { %1072 = vst [vmem:[#allocation5 + $0x20] sm:$0xff] %v1056_v27  ;;  %v850_v17 = vsel %vm843_vm12, %v1870_v36, %v830_v47  ;;  %v902_v59 = vmul.f32 0.10650697, %v848_v52  ;;  %v901_v2 = vmul.f32 %v885_v20, %v849_v61  ;;  %v887_v42 = vsel %vm1938_vm7, 0.10650697, %v2014_v39 }
 0x163   :  { %v1057_v4 = vadd.f32 %v993_v9, %v965_v25  ;;  %1071 = vst [vmem:[#allocation5 + $0x18] sm:$0xff] %v1055_v40  ;;  %v900_v15 = vmul.f32 0.10650697, %v850_v17  ;;  %v777_v21 = vmul.f32 %v761_v56, %v716_v26  ;;  %vm875_vm4 = vcmp.lt.s32.totalorder %v341_v0, 240 }
 0x164   :  { %v918_v36 = vadd.f32 %v902_v59, %v805_v37  ;;  %v917_v45 = vadd.f32 %v901_v2, %v804_v49  ;;  %v778_v9 = vmul.f32 0.10650697, %v715_v23  ;;  %v891_v40 = vsel %vm875_vm4, 0.10650697, %v2014_v39 }
 0x165   :  { %1073 = vst [vmem:[#allocation5 + $0x28] sm:$0xff] %v1057_v4  ;;  %v916_v38 = vadd.f32 %v900_v15, %v803_v46 }
 0x166   :  { %v968_v14 = vmul.f32 0.10650697, %v918_v36  ;;  %v982_v49 = vmul.f32 0.786986, %v918_v36  ;;  %v967_v63 = vmul.f32 0.10650697, %v917_v45 }
 0x167   :  { %v966_v46 = vmul.f32 0.10650697, %v916_v38  ;;  %v980_v5 = vmul.f32 0.786986, %v916_v38  ;;  %v981_v29 = vmul.f32 0.786986, %v917_v45 }
 0x168   :  { %v838_v43 = vpop.permute.xlu1 %837  ;;  %v836_v35 = vpop.permute.xlu0 %835  ;;  %v1059_v37 = vadd.f32 %v995_v62, %v967_v63  ;;  %v973_v45 = vmul.f32 0.786986, %v1866_v55 }
 0x169   :  { %v998_v31 = vadd.f32 %v982_v49, %v966_v46  ;;  %v1058_v32 = vadd.f32 %v994_v19, %v966_v46  ;;  %v845_v41 = vsel %vm843_vm12, %v838_v43, %v840_v8  ;;  %v846_v6 = vsel %vm843_vm12, %v836_v35, %v838_v43 }
 0x16a   :  { %v996_v58 = vadd.f32 %v980_v5, %v964_v24  ;;  %v997_v51 = vadd.f32 %v981_v29, %v965_v25  ;;  %v905_v11 = vmul.f32 %v889_v30, %v845_v41  ;;  %v847_v10 = vsel %vm843_vm12, %v1914_v60, %v836_v35  ;;  %1075 = vst [vmem:[#allocation5 + $0x38] sm:$0xff] %v1059_v37  ;;  %v2053_v25 = vld [vmem:[#allocation8_spill] sm:$0xff] }
 0x16b   :  { %1074 = vst [vmem:[#allocation5 + $0x30] sm:$0xff] %v1058_v32  ;;  %v904_v50 = vmul.f32 0.10650697, %v846_v6  ;;  %v903_v20 = vmul.f32 %v887_v42, %v847_v10  ;;  %v794_v24 = vmul.f32 0.786986, %v1711_v54 }
 0x16c   :  { %v1060_v27 = vadd.f32 %v996_v58, %v968_v14  ;;  %v921_v18 = vadd.f32 %v905_v11, %v808_v34  ;;  %v793_v47 = vmul.f32 0.786986, %v2053_v25 }
 0x16d   :  { %v920_v48 = vadd.f32 %v904_v50, %v807_v1  ;;  %v919_v53 = vadd.f32 %v903_v20, %v806_v22  ;;  %v810_v1 = vadd.f32 %v794_v24, %v778_v9  ;;  %v972_v22 = vmul.f32 0.786986, %v1872_v44 }
 0x16e   :  { %1076 = vst [vmem:[#allocation5 + $0x40] sm:$0xff] %v1060_v27  ;;  %v985_v3 = vmul.f32 0.786986, %v921_v18  ;;  %v809_v60 = vadd.f32 %v793_v47, %v777_v21  ;;  %v971_v52 = vmul.f32 0.10650697, %v921_v18 }
 0x16f   :  { %v970_v19 = vmul.f32 0.10650697, %v920_v48  ;;  %v984_v62 = vmul.f32 0.786986, %v920_v48  ;;  %v969_v61 = vmul.f32 0.10650697, %v919_v53 }
 0x170   :  { %v983_v17 = vmul.f32 0.786986, %v919_v53  ;;  %v842_v7 = vpop.permute.xlu0 %841 }
 0x171   :  { %v1000_v4 = vadd.f32 %v984_v62, %v968_v14  ;;  %v1062_v59 = vadd.f32 %v998_v31, %v970_v19  ;;  %v844_v54 = vsel %vm843_vm12, %v840_v8, %v842_v7  ;;  %v859_v15 = vsel %vm843_vm12, %v842_v7, %v1812_v16 }
 0x172   :  { %v999_v2 = vadd.f32 %v983_v17, %v967_v63  ;;  %v1001_v56 = vadd.f32 %v985_v3, %v969_v61  ;;  %v1061_v13 = vadd.f32 %v997_v51, %v969_v61  ;;  %v906_v57 = vmul.f32 0.10650697, %v844_v54 }
 0x173   :  { %1078 = vst [vmem:[#allocation5 + $0x50] sm:$0xff] %v1062_v59  ;;  %v907_v39 = vmul.f32 %v891_v40, %v859_v15  ;;  %v1050_v14 = vmul.f32 0.0, %v1872_v44  ;;  %v1051_v63 = vmul.f32 0.0, %v1866_v55 }
 0x174   :  { %v1063_v36 = vadd.f32 %v999_v2, %v971_v52  ;;  %1077 = vst [vmem:[#allocation5 + $0x48] sm:$0xff] %v1061_v13  ;;  %v922_v38 = vadd.f32 %v906_v57, %v809_v60 }
 0x175   :  { %v923_v30 = vadd.f32 %v907_v39, %v810_v1 }
 0x176   :  { %1079 = vst [vmem:[#allocation5 + $0x58] sm:$0xff] %v1063_v36  ;;  %v956_v42 = vmul.f32 0.0, %v922_v38  ;;  %v986_v0 = vmul.f32 0.786986, %v922_v38  ;;  %v1048_v28 = vmul.f32 0.10650697, %v922_v38 }
 0x177   :  { %v957_v16 = vmul.f32 0.0, %v923_v30  ;;  %v987_v26 = vmul.f32 0.786986, %v923_v30  ;;  %v1049_v8 = vmul.f32 0.10650697, %v923_v30 }
 0x178   :  { %v988_v49 = vadd.f32 %v972_v22, %v956_v42  ;;  %v1002_v46 = vadd.f32 %v986_v0, %v970_v19  ;;  %v1064_v34 = vadd.f32 %v1048_v28, %v1000_v4 }
 0x179   :  { %v989_v5 = vadd.f32 %v973_v45, %v957_v16  ;;  %v1003_v29 = vadd.f32 %v987_v26, %v971_v52  ;;  %v1065_v43 = vadd.f32 %v1049_v8, %v1001_v56 }
 0x17a   :  { %v1052_v35 = vadd.f32 %v988_v49, %v1887_v33  ;;  %v1066_v31 = vadd.f32 %v1050_v14, %v1002_v46  ;;  %1080 = vst [vmem:[#allocation5 + $0x60] sm:$0xff] %v1064_v34 }
 0x17b   :  { %v1053_v44 = vadd.f32 %v989_v5, %v1918_v12  ;;  %v1067_v32 = vadd.f32 %v1051_v63, %v1003_v29  ;;  %1081 = vst [vmem:[#allocation5 + $0x68] sm:$0xff] %v1065_v43 }
 0x17c   :  { %1068 = vst [vmem:[#allocation5] sm:$0xff] %v1052_v35 }
 0x17d   :  { %1069 = vst [vmem:[#allocation5 + $0x8] sm:$0xff] %v1053_v44 }
 0x17e   :  { %1082 = vst [vmem:[#allocation5 + $0x70] sm:$0xff] %v1066_v31 }
 0x17f   :  { %1083 = vst [vmem:[#allocation5 + $0x78] sm:$0xff] %v1067_v32 }
 0x180   :  { %1094 = dma.vmem_to_hbm [thread:$0]  %s1090_s15, 2048, %s1092_s18, [#allocation4]  }
 0x181   :  { %1158 = dma.done.wait [#allocation4], 2048  }
 0x182   :  { %1159 = vsyncadd [#allocation4], 4294965248 }
 0x183   :  { %1099 = vsyncpa [#allocation3], 1 }
 0x184   :  { %1100 = vsyncpa [#allocation4], 1 }

</bundles_post_ra>
